<compile_context>
chip_gen: v6e
topology: v6e:2x2x1
jax: 0.10.0
libtpu: 0.0.40
codegen_flags: <defaults>
</compile_context>

<pallas_src>
import functools

import jax
import jax.numpy as jnp
from jax.experimental import pallas as pl
from jax.experimental.pallas import tpu as pltpu

_CLAMP_MIN = 1e-6
_CLAMP_MAX = 1e6

_PER_BUFFER_BUDGET = 8 * 1024 * 1024   # per-input-buffer VMEM budget (bytes, f32-equiv)


def _logvar_kernel(x_ref, o_ref, *, inv_n, inv_nm1, lane_dense):
    # x_ref: (tm, R) tile in VMEM; reduce along the last (lane) axis.
    x = x_ref[...].astype(jnp.float32)
    mean = jnp.sum(x, axis=-1, keepdims=True) * inv_n             # (tm, 1)
    d = x - mean
    var = jnp.sum(d * d, axis=-1, keepdims=True) * inv_nm1        # (tm, 1) unbiased
    logvar = jnp.log(jnp.clip(var, _CLAMP_MIN, _CLAMP_MAX))       # (tm, 1)
    if lane_dense:
        # Lane-dense (1, 1, tm) row store: unmasked vst (tm is a multiple of
        # 128); the sublane->lane relayout is cheap XLU work hidden under the
        # HBM-bound input DMA.
        o_ref[...] = logvar.reshape(o_ref.shape).astype(o_ref.dtype)
    else:
        o_ref[...] = logvar.astype(o_ref.dtype)


def _round_up(n, m):
    return ((n + m - 1) // m) * m


def _pick_row_tile(rows, r, itemsize):
    """Balanced row tile: near the VMEM budget, >=4 grid steps when possible."""
    sub = max(8, 32 // max(1, itemsize))            # dtype-aware sublane multiple
    rows_al = _round_up(max(rows, 1), sub)
    # Budget in f32-equivalent, lane-padded bytes so the in-kernel fp32
    # intermediates and the VMEM lane padding for small R are covered.
    r_pad = _round_up(max(r, 1), 128)
    budget_tm = max(sub, _PER_BUFFER_BUDGET // (r_pad * 4))
    num_tiles = pl.cdiv(rows_al, budget_tm)
    # Prefer >= 4 grid steps (>= 2 row tiles per v7x TensorCore) when rows
    # allow it; harmless (~0.35 us/step) on v5e/v6e.
    min_tiles = max(1, min(4, rows_al // sub))
    num_tiles = max(num_tiles, min_tiles)
    tm = _round_up(pl.cdiv(rows_al, num_tiles), sub)
    if tm >= 128:
        tm = (tm // 128) * 128      # 128-aligned -> unmasked lane-dense stores
    return tm


def _logvar_rows(x2d, tm, out_dtype):
    """x2d: (rows, R) -> (rows, 1) unbiased log-variance over the last axis."""
    rows, r = x2d.shape
    num_steps = pl.cdiv(rows, tm)                   # no padding: partial last block
    lane_dense = (tm % 128 == 0)
    inv_n = 1.0 / float(r)
    inv_nm1 = 1.0 / float(r - 1) if r > 1 else float("nan")  # match torch NaN for N=1

    kernel = functools.partial(
        _logvar_kernel, inv_n=inv_n, inv_nm1=inv_nm1, lane_dense=lane_dense)

    in_itemsize = jnp.dtype(x2d.dtype).itemsize
    out_itemsize = jnp.dtype(out_dtype).itemsize
    cost = pl.CostEstimate(
        flops=3 * rows * r,
        transcendentals=rows,
        bytes_accessed=rows * r * in_itemsize + rows * out_itemsize,
    )

    if lane_dense:
        out_shape = jax.ShapeDtypeStruct((num_steps, 1, tm), out_dtype)
        out_spec = pl.BlockSpec((1, 1, tm), lambda i: (i, 0, 0))
    else:
        out_shape = jax.ShapeDtypeStruct((rows, 1), out_dtype)
        out_spec = pl.BlockSpec((tm, 1), lambda i: (i, 0))

    y = pl.pallas_call(
        kernel,
        out_shape=out_shape,
        grid_spec=pltpu.PrefetchScalarGridSpec(
            num_scalar_prefetch=0,
            grid=(num_steps,),
            in_specs=[pl.BlockSpec((tm, r), lambda i: (i, 0))],
            out_specs=out_spec,
        ),
        compiler_params=pltpu.CompilerParams(
            dimension_semantics=("parallel",),
            vmem_limit_bytes=32 * 1024 * 1024,
        ),
        cost_estimate=cost,
    )(x2d)
    # Row tiles are contiguous, in-order blocks -> flatten + trim dead tail rows.
    return y.reshape(-1, 1)[:rows]


def log_var_layer(x, dim=3):
    """Pallas equivalent of LogVarLayer(dim).forward(x)."""
    ndim = x.ndim
    dim = dim % ndim
    out_dtype = x.dtype if jnp.issubdtype(x.dtype, jnp.floating) else jnp.float32

    # Move the reduction axis last (no-op for FBCNet's dim = last axis).
    x_moved = jnp.moveaxis(x, dim, -1)
    lead_shape = x_moved.shape[:-1]
    r = x_moved.shape[-1]
    rows = 1
    for s in lead_shape:
        rows *= s
    x2d = x_moved.reshape(rows, r)

    tm = _pick_row_tile(rows, r, jnp.dtype(x2d.dtype).itemsize)
    y2d = _logvar_rows(x2d, tm, out_dtype)

    y = y2d.reshape(*lead_shape, 1)                  # keepdim on the moved axis
    return jnp.moveaxis(y, -1, dim)                  # put the size-1 axis back


if __name__ == "__main__":
    key = jax.random.PRNGKey(0)
    k1, k2 = jax.random.split(key)
    dim = 3                                          # FBCNet LogVarLayer(dim=3)

    # Small NCHW-style example (exercises the column-store path, full blocks).
    x1 = jax.random.normal(k1, (2, 4, 16, 16), dtype=jnp.float32)
    y1 = jax.block_until_ready(log_var_layer(x1, dim=dim))
    ref1 = jnp.log(jnp.clip(jnp.var(x1, axis=dim, ddof=1, keepdims=True),
                            _CLAMP_MIN, _CLAMP_MAX))
    assert y1.shape == ref1.shape == (2, 4, 16, 1), y1.shape
    assert jnp.allclose(y1, ref1, atol=1e-4, rtol=1e-4), float(
        jnp.max(jnp.abs(y1 - ref1)))

    # FBCNet-like (batch, bands*m, windows, time): exercises the lane-dense
    # 128-aligned output path and an un-padded partial last row tile.
    x2 = jax.random.normal(k2, (2, 9, 32, 256), dtype=jnp.float32)
    y2 = jax.block_until_ready(log_var_layer(x2, dim=dim))
    ref2 = jnp.log(jnp.clip(jnp.var(x2, axis=dim, ddof=1, keepdims=True),
                            _CLAMP_MIN, _CLAMP_MAX))
    assert y2.shape == ref2.shape == (2, 9, 32, 1), y2.shape
    assert jnp.allclose(y2, ref2, atol=1e-4, rtol=1e-4), float(
        jnp.max(jnp.abs(y2 - ref2)))

    print("KERNEL_OK")
</pallas_src>

<mosaic_0001>
module attributes {stable_mosaic.version = 11 : i64} {
  func.func @_logvar_kernel(%arg0: i32, %arg1: memref<32x16xf32, #tpu.memory_space<vmem>>, %arg2: memref<32x1xf32, #tpu.memory_space<vmem>>) attributes {dimension_semantics = [#tpu.dimension_semantics<parallel>], iteration_bounds = array<i64: 4>, scalar_prefetch = 0 : i64, scratch_operands = 0 : i64, tpu.core_type = #tpu.core_type<tc>, window_params = [{transform_indices = @transform_0, window_bounds = array<i64: 32, 16>}, {transform_indices = @transform_1, window_bounds = array<i64: 32, 1>}]} {
    %c0 = arith.constant 0 : index
    %c0_0 = arith.constant 0 : index
    %0 = vector.load %arg1[%c0, %c0_0] : memref<32x16xf32, #tpu.memory_space<vmem>>, vector<32x16xf32>
    %cst = arith.constant dense<0.000000e+00> : vector<32xf32>
    %1 = vector.multi_reduction <add>, %0, %cst [1] : vector<32x16xf32> to vector<32xf32>
    %2 = vector.shape_cast %1 : vector<32xf32> to vector<32x1xf32>
    %cst_1 = arith.constant 6.250000e-02 : f32
    %3 = vector.broadcast %cst_1 : f32 to vector<32x1xf32>
    %4 = arith.mulf %2, %3 : vector<32x1xf32>
    %5 = vector.broadcast %4 : vector<32x1xf32> to vector<32x16xf32>
    %6 = arith.subf %0, %5 : vector<32x16xf32>
    %7 = arith.mulf %6, %6 : vector<32x16xf32>
    %cst_2 = arith.constant dense<0.000000e+00> : vector<32xf32>
    %8 = vector.multi_reduction <add>, %7, %cst_2 [1] : vector<32x16xf32> to vector<32xf32>
    %9 = vector.shape_cast %8 : vector<32xf32> to vector<32x1xf32>
    %cst_3 = arith.constant 0.0666666701 : f32
    %10 = vector.broadcast %cst_3 : f32 to vector<32x1xf32>
    %11 = arith.mulf %9, %10 : vector<32x1xf32>
    %cst_4 = arith.constant 9.99999997E-7 : f32
    %cst_5 = arith.constant 1.000000e+06 : f32
    %12 = vector.broadcast %cst_4 : f32 to vector<32x1xf32>
    %13 = arith.maximumf %12, %11 : vector<32x1xf32>
    %14 = vector.broadcast %cst_5 : f32 to vector<32x1xf32>
    %15 = arith.minimumf %14, %13 : vector<32x1xf32>
    %16 = math.log %15 : vector<32x1xf32>
    %c0_6 = arith.constant 0 : index
    %c0_7 = arith.constant 0 : index
    %17 = vector.load %arg2[%c0_6, %c0_7] : memref<32x1xf32, #tpu.memory_space<vmem>>, vector<32x1xf32>
    tpu.vector_store %arg2[%c0_6, %c0_7], %16 {strides = array<i32>} : memref<32x1xf32, #tpu.memory_space<vmem>>, vector<32x1xf32>,
    return
  }
  func.func @transform_0(%arg0: i32) -> (i32, i32) {
    %c0_i32 = arith.constant 0 : i32
    %c0_i32_0 = arith.constant 0 : i32
    return %arg0, %c0_i32 : i32, i32
  }
  func.func @transform_1(%arg0: i32) -> (i32, i32) {
    %c0_i32 = arith.constant 0 : i32
    %c0_i32_0 = arith.constant 0 : i32
    return %arg0, %c0_i32 : i32, i32
  }
}

</mosaic_0001>

<bundles_post_ra>
// kernel: tpu_custom_call.1
= control target key start
LH: loop header
LB: loop body
LE: loop exit
PB: predicated region body
PF: predicated region fallthrough
CT: control target
= control target key end

     0   :  { %s287_s6 = smov 0   ;;  %s319_s0 = inlined_call_operand.vmem [shape: f32[128,16], index: 0, kind: input, shape index: {}]   ;;  %s320_s1 = inlined_call_operand.vmem [shape: f32[128,1], index: 1, kind: output, shape index: {}]  }
   0x1 LB: > { %s242_s7 = sadd.s32 4294967295, %s275_s6   ;;  %p246_p0 = scmp.ge.s32.totalorder %s275_s6, 1  ;;  %s275_s6 = sphi %s287_s6, %s11_s6  }
   0x2   : > { %p88_p1 = scmp.lt.s32.totalorder %s275_s6, 5 }
   0x4   : > { %p89_p2 = pnand %p246_p0, %p88_p1 }
   0x5   : > { %s247_s8 = sshll.u32 (!%p89_p2), %s242_s7, 2 }
   0x6   : > { %92 = sbr.rel (%p89_p2) target bundleno = 330 (0x14a), region = 24  ;;  %p109_p3 = scmp.lt.s32.totalorder (!%p89_p2), %s247_s8, 15 }
   0xb   : > { %s322_s8 = smov (!%p109_p3, %s247_s8), 15  ;;  %vm124_vm0 = vcmask 130048   ;;  %vm181_vm1 = vcmask 7168  }
   0xc   : > { %s248_s9 = sshll.u32 %s322_s8, 3 }
   0xd   : > { %s112_s12 = scalar_lea.vmem %s319_s0, %s248_s9  ;;  %s118_s15 = scalar_lea.vmem %s320_s1, %s248_s9 }
   0xe   : > { %v120_v0 = vld [vmem:[%s112_s12] sm:$0xff]  ;;  %v122_v1 = vld [vmem:[%s112_s12 + $0x10] sm:$0xff]  ;;  %v121_v2 = vld [vmem:[%s112_s12 + $0x8] sm:$0xff] }
   0xf   : > { %v125_v3 = vsel %vm124_vm0, %v120_v0, 0.0  ;;  %v131_v4 = vsel %vm124_vm0, %v122_v1, 0.0  ;;  %v123_v5 = vld [vmem:[%s112_s12 + $0x18] sm:$0xff]  ;;  %v128_v6 = vsel %vm124_vm0, %v121_v2, 0.0 }
  0x10   : > { %126 = vadd.xlane.f32.xlu0 %v125_v3  ;;  %132 = vadd.xlane.f32.xlu1 %v131_v4  ;;  %v134_v7 = vsel %vm124_vm0, %v123_v5, 0.0 }
  0x14   : > { %129 = vadd.xlane.f32.xlu0 %v128_v6  ;;  %135 = vadd.xlane.f32.xlu1 %v134_v7 }
  0x99   : > { %v127_v8 = vpop.xlane.xlu0 %126  ;;  %v133_v9 = vpop.xlane.xlu1 %132 }
  0x9a   : > { %v137_v10 = vmul.f32 0.0625, %v127_v8  ;;  %v139_v11 = vmul.f32 0.0625, %v133_v9 }
  0x9c   : > { %v141_v12 = vsub.f32 %v120_v0, %v137_v10  ;;  %v143_v13 = vsub.f32 %v122_v1, %v139_v11 }
  0x9d   : > { %v130_v14 = vpop.xlane.xlu0 %129  ;;  %v136_v15 = vpop.xlane.xlu1 %135 }
  0x9e   : > { %v138_v16 = vmul.f32 0.0625, %v130_v14  ;;  %v140_v17 = vmul.f32 0.0625, %v136_v15  ;;  %v145_v18 = vmul.f32 %v141_v12, %v141_v12  ;;  %v147_v19 = vmul.f32 %v143_v13, %v143_v13 }
  0xa0   : > { %v142_v20 = vsub.f32 %v121_v2, %v138_v16  ;;  %v144_v21 = vsub.f32 %v123_v5, %v140_v17  ;;  %v149_v22 = vsel %vm124_vm0, %v145_v18, 0.0  ;;  %v155_v23 = vsel %vm124_vm0, %v147_v19, 0.0 }
  0xa1   : > { %150 = vadd.xlane.f32.xlu0 %v149_v22 }
  0xa2   : > { %v146_v24 = vmul.f32 %v142_v20, %v142_v20  ;;  %v148_v25 = vmul.f32 %v144_v21, %v144_v21 }
  0xa4   : > { %v152_v26 = vsel %vm124_vm0, %v146_v24, 0.0  ;;  %v158_v27 = vsel %vm124_vm0, %v148_v25, 0.0 }
  0xa5   : > { %156 = vadd.xlane.f32.xlu0 %v155_v23  ;;  %153 = vadd.xlane.f32.xlu1 %v152_v26 }
  0xa9   : > { %159 = vadd.xlane.f32.xlu1 %v158_v27 }
 0x12a   : > { %v151_v28 = vpop.xlane.xlu0 %150 }
 0x12b   : > { %v161_v29 = vmul.f32 0.06666667, %v151_v28 }
 0x12d   : > { %v165_v30 = vmax.f32 %v161_v29, 1e-06 }
 0x12e   : > { %v154_v31 = vpop.xlane.xlu1 %153  ;;  %v157_v32 = vpop.xlane.xlu0 %156 }
 0x12f   : > { %v169_v33 = vmin.f32 %v165_v30, 1000000.0  ;;  %v162_v34 = vmul.f32 0.06666667, %v154_v31  ;;  %v163_v35 = vmul.f32 0.06666667, %v157_v32 }
 0x131   : > { %261 = vlog2.f32 %v169_v33  ;;  %v166_v36 = vmax.f32 %v162_v34, 1e-06  ;;  %v167_v37 = vmax.f32 %v163_v35, 1e-06 }
 0x132   : > { %v160_v38 = vpop.xlane.xlu1 %159 }
 0x133   : > { %v170_v39 = vmin.f32 %v166_v36, 1000000.0  ;;  %v171_v40 = vmin.f32 %v167_v37, 1000000.0  ;;  %v164_v41 = vmul.f32 0.06666667, %v160_v38 }
 0x135   : > { %263 = vlog2.f32 %v170_v39  ;;  %v168_v42 = vmax.f32 %v164_v41, 1e-06 }
 0x136   : > { %265 = vlog2.f32 %v171_v40 }
 0x137   : > { %v172_v43 = vmin.f32 %v168_v42, 1000000.0 }
 0x139   : > { %267 = vlog2.f32 %v172_v43 }
 0x13e   : > { %v262_v44 = vpop.eup %261 }
 0x13f   : > { %v174_v45 = vmul.f32 0.6931472, %v262_v44 }
 0x141   : > { %182 = vst.msk [vmem:[%s118_s15] sm:$0xff] %vm181_vm1, %v174_v45 }
 0x142   : > { %v264_v46 = vpop.eup %263 }
 0x143   : > { %v266_v47 = vpop.eup %265  ;;  %v176_v48 = vmul.f32 0.6931472, %v264_v46 }
 0x144   : > { %v178_v49 = vmul.f32 0.6931472, %v266_v47 }
 0x145   : > { %183 = vst.msk [vmem:[%s118_s15 + $0x8] sm:$0xff] %vm181_vm1, %v176_v48 }
 0x146   : > { %v268_v50 = vpop.eup %267  ;;  %184 = vst.msk [vmem:[%s118_s15 + $0x10] sm:$0xff] %vm181_vm1, %v178_v49 }
 0x147   : > { %v180_v51 = vmul.f32 0.6931472, %v268_v50 }
 0x149   : > { %185 = vst.msk [vmem:[%s118_s15 + $0x18] sm:$0xff] %vm181_vm1, %v180_v51 }
 0x14a PF: > { %s11_s6 = sadd.s32 1, %s275_s6  }
 0x14b   : > { %p8_p4 = scmp.ge.s32.totalorder %s11_s6, 6  }
 0x14d   :  { %10 = sbr.rel (!%p8_p4) target bundleno = 1 (0x1), region = 54 }

</bundles_post_ra>
